<compile_context>
chip_gen: v7x
topology: tpu7x:2x2x1
jax: 0.10.0
libtpu: 0.0.40
codegen_flags: <defaults>
</compile_context>

<pallas_src>
import jax
import jax.numpy as jnp
from jax.experimental import pallas as pl
from jax.experimental.pallas import tpu as pltpu

IN_FEATURES = 28 * 28      # 784
HIDDEN = 128
OUT_FEATURES = 10
OUT_PADDED = 128           # lane-dense output width (multiple of 128)


def _round_up(a, m):
    return ((a + m - 1) // m) * m


def mlp_kernel(x_ref, w1_ref, b1_ref, w2_ref, b2_ref, o_ref):
    # x_ref:  (TM, 784)  bf16      w1_ref: (784, 128) bf16   b1_ref: (1, 128) f32
    # w2_ref: (128, 128) bf16      b2_ref: (1, 128)   f32    o_ref:  (TM, 128) f32
    x = x_ref[...]
    h = jnp.dot(x, w1_ref[...], preferred_element_type=jnp.float32)
    h = jnp.maximum(h + b1_ref[...], 0.0)            # bias + ReLU on the VPU (f32)
    h = h.astype(jnp.bfloat16)                       # back to MXU-native precision
    o = jnp.dot(h, w2_ref[...], preferred_element_type=jnp.float32) + b2_ref[...]
    o_ref[...] = o.astype(o_ref.dtype)


def simple_nn_forward(x_nchw, w1, b1, w2, b2, *, tm=512):
    """x_nchw: (N, 1, 28, 28) float32 -> logits (N, 10) float32."""
    n = x_nchw.shape[0]
    x_flat = x_nchw.reshape(n, -1)                   # nn.Flatten (row-major)

    # --- batch tiling: pad N to a multiple of TM (padded rows sliced off) ---
    tm = min(tm, _round_up(n, 8))                    # small batches: one tile
    n_pad = _round_up(n, tm)
    if n_pad != n:
        x_flat = jnp.pad(x_flat, ((0, n_pad - n), (0, 0)))

    # --- bf16 activations/weights, f32 biases & accumulation ---
    x_bf16 = x_flat.astype(jnp.bfloat16)
    w1_bf16 = w1.astype(jnp.bfloat16)
    # lane-dense second layer: pad 10 -> 128 output columns with zeros
    w2_pad = jnp.zeros((HIDDEN, OUT_PADDED), jnp.bfloat16).at[:, :OUT_FEATURES].set(
        w2.astype(jnp.bfloat16)
    )
    b1_f32 = b1.astype(jnp.float32)
    b2_pad = jnp.zeros((1, OUT_PADDED), jnp.float32).at[:, :OUT_FEATURES].set(
        b2.astype(jnp.float32)
    )

    grid = (n_pad // tm,)
    cost = pl.CostEstimate(
        flops=2 * n_pad * (IN_FEATURES * HIDDEN + HIDDEN * OUT_PADDED),
        bytes_accessed=(
            n_pad * IN_FEATURES * 2            # x (bf16)
            + IN_FEATURES * HIDDEN * 2         # W1 (bf16)
            + HIDDEN * OUT_PADDED * 2          # W2 (bf16)
            + (HIDDEN + OUT_PADDED) * 4        # biases (f32)
            + n_pad * OUT_PADDED * 4           # output (f32)
        ),
        transcendentals=0,
    )

    out_pad = pl.pallas_call(
        mlp_kernel,
        out_shape=jax.ShapeDtypeStruct((n_pad, OUT_PADDED), jnp.float32),
        grid=grid,
        in_specs=[
            pl.BlockSpec((tm, IN_FEATURES), lambda i: (i, 0)),        # x tile
            pl.BlockSpec((IN_FEATURES, HIDDEN), lambda i: (0, 0)),    # W1 resident
            pl.BlockSpec((1, HIDDEN), lambda i: (0, 0)),              # b1 resident
            pl.BlockSpec((HIDDEN, OUT_PADDED), lambda i: (0, 0)),     # W2 resident
            pl.BlockSpec((1, OUT_PADDED), lambda i: (0, 0)),          # b2 resident
        ],
        out_specs=pl.BlockSpec((tm, OUT_PADDED), lambda i: (i, 0)),
        compiler_params=pltpu.CompilerParams(
            dimension_semantics=("parallel",),       # v7x: shard batch over 2 TCs
            vmem_limit_bytes=64 * 1024 * 1024,
        ),
        cost_estimate=cost,
    )(x_bf16, w1_bf16, b1_f32, w2_pad, b2_pad)

    return out_pad[:n, :OUT_FEATURES]


def init_params(key):
    """Deterministic init matching the PyTorch layer shapes.

    fc1: Linear(784, 128) -> W1 (784, 128), b1 (1, 128)
    fc2: Linear(128, 10)  -> W2 (128, 10),  b2 (1, 10)
    (Stored transposed relative to torch's (out, in) convention.)
    """
    k1, k2, k3, k4 = jax.random.split(key, 4)
    bound1 = 1.0 / jnp.sqrt(float(IN_FEATURES))
    bound2 = 1.0 / jnp.sqrt(float(HIDDEN))
    w1 = jax.random.uniform(k1, (IN_FEATURES, HIDDEN), jnp.float32, -bound1, bound1)
    b1 = jax.random.uniform(k2, (1, HIDDEN), jnp.float32, -bound1, bound1)
    w2 = jax.random.uniform(k3, (HIDDEN, OUT_FEATURES), jnp.float32, -bound2, bound2)
    b2 = jax.random.uniform(k4, (1, OUT_FEATURES), jnp.float32, -bound2, bound2)
    return w1, b1, w2, b2


if __name__ == "__main__":
    key = jax.random.PRNGKey(0)
    k_x, k_p = jax.random.split(key)

    batch = 8
    x = jax.random.normal(k_x, (batch, 1, 28, 28), jnp.float32)
    w1, b1, w2, b2 = init_params(k_p)

    out = simple_nn_forward(x, w1, b1, w2, b2)
    out = jax.block_until_ready(out)
    assert out.shape == (batch, OUT_FEATURES)

    # Pure-JAX reference with the same bf16 casts / f32 accumulation.
    x_flat = x.reshape(batch, -1).astype(jnp.bfloat16)
    h_ref = jnp.maximum(
        jnp.dot(x_flat, w1.astype(jnp.bfloat16), preferred_element_type=jnp.float32)
        + b1,
        0.0,
    ).astype(jnp.bfloat16)
    ref = (
        jnp.dot(h_ref, w2.astype(jnp.bfloat16), preferred_element_type=jnp.float32)
        + b2
    )
    assert jnp.allclose(out, ref, atol=2e-2, rtol=2e-2)

    # Also sanity-check against the full-f32 math (looser tolerance for bf16).
    ref_f32 = jnp.maximum(x.reshape(batch, -1) @ w1 + b1, 0.0) @ w2 + b2
    assert jnp.allclose(out, ref_f32, atol=5e-2, rtol=5e-2)

    print("KERNEL_OK")
</pallas_src>

<mosaic_0001>
module attributes {stable_mosaic.version = 11 : i64} {
  func.func @mlp_kernel(%arg0: i32, %arg1: memref<8x784xbf16, #tpu.memory_space<vmem>>, %arg2: memref<784x128xbf16, #tpu.memory_space<vmem>>, %arg3: memref<1x128xf32, #tpu.memory_space<vmem>>, %arg4: memref<128x128xbf16, #tpu.memory_space<vmem>>, %arg5: memref<1x128xf32, #tpu.memory_space<vmem>>, %arg6: memref<8x128xf32, #tpu.memory_space<vmem>>) attributes {dimension_semantics = [#tpu.dimension_semantics<parallel>], iteration_bounds = array<i64: 1>, scalar_prefetch = 0 : i64, scratch_operands = 0 : i64, tpu.core_type = #tpu.core_type<tc>, window_params = [{transform_indices = @transform_0, window_bounds = array<i64: 8, 784>}, {pipeline_mode = #tpu.pipeline_mode<synchronous>, transform_indices = @transform_1, window_bounds = array<i64: 784, 128>}, {pipeline_mode = #tpu.pipeline_mode<synchronous>, transform_indices = @transform_2, window_bounds = array<i64: 1, 128>}, {pipeline_mode = #tpu.pipeline_mode<synchronous>, transform_indices = @transform_3, window_bounds = array<i64: 128, 128>}, {pipeline_mode = #tpu.pipeline_mode<synchronous>, transform_indices = @transform_4, window_bounds = array<i64: 1, 128>}, {transform_indices = @transform_5, window_bounds = array<i64: 8, 128>}]} {
    %c0 = arith.constant 0 : index
    %c0_0 = arith.constant 0 : index
    %0 = vector.load %arg1[%c0, %c0_0] : memref<8x784xbf16, #tpu.memory_space<vmem>>, vector<8x784xbf16>
    %c0_1 = arith.constant 0 : index
    %c0_2 = arith.constant 0 : index
    %1 = vector.load %arg2[%c0_1, %c0_2] : memref<784x128xbf16, #tpu.memory_space<vmem>>, vector<784x128xbf16>
    %cst = arith.constant dense<0.000000e+00> : vector<8x128xf32>
    %2 = tpu.matmul %0, %1, %cst {dimension_numbers = #tpu.dot_dimension_numbers<[1], [0], [0], [1], [0, 0, 1, 1], [], []>} : vector<8x784xbf16>, vector<784x128xbf16>, vector<8x128xf32> -> vector<8x128xf32>
    %c0_3 = arith.constant 0 : index
    %c0_4 = arith.constant 0 : index
    %3 = vector.load %arg3[%c0_3, %c0_4] : memref<1x128xf32, #tpu.memory_space<vmem>>, vector<1x128xf32>
    %4 = vector.broadcast %3 : vector<1x128xf32> to vector<8x128xf32>
    %5 = arith.addf %2, %4 : vector<8x128xf32>
    %cst_5 = arith.constant 0.000000e+00 : f32
    %6 = vector.broadcast %cst_5 : f32 to vector<8x128xf32>
    %7 = arith.maximumf %5, %6 : vector<8x128xf32>
    %8 = arith.truncf %7 : vector<8x128xf32> to vector<8x128xbf16>
    %c0_6 = arith.constant 0 : index
    %c0_7 = arith.constant 0 : index
    %9 = vector.load %arg4[%c0_6, %c0_7] : memref<128x128xbf16, #tpu.memory_space<vmem>>, vector<128x128xbf16>
    %cst_8 = arith.constant dense<0.000000e+00> : vector<8x128xf32>
    %10 = tpu.matmul %8, %9, %cst_8 {dimension_numbers = #tpu.dot_dimension_numbers<[1], [0], [0], [1], [0, 0, 1, 1], [], []>} : vector<8x128xbf16>, vector<128x128xbf16>, vector<8x128xf32> -> vector<8x128xf32>
    %c0_9 = arith.constant 0 : index
    %c0_10 = arith.constant 0 : index
    %11 = vector.load %arg5[%c0_9, %c0_10] : memref<1x128xf32, #tpu.memory_space<vmem>>, vector<1x128xf32>
    %12 = vector.broadcast %11 : vector<1x128xf32> to vector<8x128xf32>
    %13 = arith.addf %10, %12 : vector<8x128xf32>
    %c0_11 = arith.constant 0 : index
    %c0_12 = arith.constant 0 : index
    %14 = vector.load %arg6[%c0_11, %c0_12] : memref<8x128xf32, #tpu.memory_space<vmem>>, vector<8x128xf32>
    tpu.vector_store %arg6[%c0_11, %c0_12], %13 {strides = array<i32>} : memref<8x128xf32, #tpu.memory_space<vmem>>, vector<8x128xf32>,
    return
  }
  func.func @transform_0(%arg0: i32) -> (i32, i32) {
    %c0_i32 = arith.constant 0 : i32
    %c0_i32_0 = arith.constant 0 : i32
    return %arg0, %c0_i32 : i32, i32
  }
  func.func @transform_1(%arg0: i32) -> (i32, i32) {
    %c0_i32 = arith.constant 0 : i32
    %c0_i32_0 = arith.constant 0 : i32
    %c0_i32_1 = arith.constant 0 : i32
    return %c0_i32, %c0_i32_0 : i32, i32
  }
  func.func @transform_2(%arg0: i32) -> (i32, i32) {
    %c0_i32 = arith.constant 0 : i32
    %c0_i32_0 = arith.constant 0 : i32
    %c0_i32_1 = arith.constant 0 : i32
    return %c0_i32, %c0_i32_0 : i32, i32
  }
  func.func @transform_3(%arg0: i32) -> (i32, i32) {
    %c0_i32 = arith.constant 0 : i32
    %c0_i32_0 = arith.constant 0 : i32
    %c0_i32_1 = arith.constant 0 : i32
    return %c0_i32, %c0_i32_0 : i32, i32
  }
  func.func @transform_4(%arg0: i32) -> (i32, i32) {
    %c0_i32 = arith.constant 0 : i32
    %c0_i32_0 = arith.constant 0 : i32
    %c0_i32_1 = arith.constant 0 : i32
    return %c0_i32, %c0_i32_0 : i32, i32
  }
  func.func @transform_5(%arg0: i32) -> (i32, i32) {
    %c0_i32 = arith.constant 0 : i32
    %c0_i32_0 = arith.constant 0 : i32
    return %arg0, %c0_i32 : i32, i32
  }
}

</mosaic_0001>

<bundles_post_ra>
// kernel: tpu_custom_call.1
= control target key start
LH: loop header
LB: loop body
LE: loop exit
PB: predicated region body
PF: predicated region fallthrough
CT: control target
= control target key end

     0   :  { %10 = vsyncpa [#allocation3], 0  ;;  %s1304_s0 = inlined_call_operand.hbm [shape: bf16[8,784], index: 0, kind: input, shape index: {}]   ;;  %s1305_s1 = inlined_call_operand.hbm [shape: bf16[784,128], index: 1, kind: input, shape index: {}]   ;;  %s1306_s2 = inlined_call_operand.hbm [shape: f32[1,128], index: 2, kind: input, shape index: {}]   ;;  %s1307_s3 = inlined_call_operand.hbm [shape: bf16[128,128], index: 3, kind: input, shape index: {}]   ;;  %s1308_s4 = inlined_call_operand.hbm [shape: f32[1,128], index: 4, kind: input, shape index: {}]   ;;  %s1309_s5 = inlined_call_operand.hbm [shape: f32[8,128], index: 5, kind: output, shape index: {}]  }
   0x1   :  { %11 = vsyncpa [#allocation6], 0 }
   0x2   :  { %12 = vsyncpa [#allocation9], 0 }
   0x3   :  { %13 = vsyncpa [#allocation4], 0  ;;  %s1190_s18 = smov [#allocation5]   ;;  %s1050_s22 = scalar_lea.hbm %s1305_s1, 6272 }
   0x4   :  { %s29_s19 = sshll.u32 %s1190_s18, 4  ;;  %p1051_p0 = scmp.ne.s32.totalorder %s1305_s1, %s1050_s22  ;;  %s30_s19 = int_to_ptr.vmem [resolvable:$true] %s29_s19 }
   0x5   :  { %p1054_p1 = scmp.lt.u32.totalorder %s1050_s22, %s1305_s1 }
   0x7   :  { %p1056_p2 = pnand %p1054_p1, %p1051_p0 }
   0x9   :  { %1059 = shalt.err (!%p1056_p2)
}
   0xa   :  { %s1060_s27 = scalar_lea.vmem %s30_s19, 6272  ;;  %p1065_p4 = scmp.lt.s32.totalorder %s30_s19, %s30_s19 }
   0xb   :  { %p1061_p3 = scmp.ne.s32.totalorder %s30_s19, %s1060_s27  ;;  %p1066_p5 = scmp.lt.s32.totalorder %s1060_s27, %s1060_s27 }
   0xd   :  { %p1067_p6 = por %p1066_p5, %p1065_p4 }
   0xf   :  { %p1068_p7 = pnand %p1067_p6, %p1061_p3 }
  0x11   :  { %1071 = shalt.err (!%p1068_p7)
}
  0x12   :  { %s1191_s28 = smov 64   ;;  %s1192_s29 = smov 4  }
  0x13   :  { %35 = dma.hbm_to_vmem [thread:$0]  %s1305_s1, 6272, %s30_s19, [#allocation6], %s1191_s28, %s1191_s28, %s1192_s29  }
  0x14   :  { %s1193_s7 = smov [#allocation8]   ;;  %s1194_s9 = smov [#allocation2]  }
  0x15   :  { %s51_s8 = sshll.u32 %s1193_s7, 4  ;;  %s20_s10 = sshll.u32 %s1194_s9, 4  ;;  %s52_s8 = int_to_ptr.vmem [resolvable:$true] %s51_s8  ;;  %s21_s10 = int_to_ptr.vmem [resolvable:$true] %s20_s10 }
  0x16   :  { %s1072_s13 = scalar_lea.hbm %s1307_s3, 1024 }
  0x17   :  { %p1073_p8 = scmp.ne.s32.totalorder %s1307_s3, %s1072_s13  ;;  %p1076_p9 = scmp.lt.u32.totalorder %s1072_s13, %s1307_s3 }
  0x19   :  { %p1078_p10 = pnand %p1076_p9, %p1073_p8 }
  0x1b   :  { %1081 = shalt.err (!%p1078_p10)
}
  0x1c   :  { %s1082_s1 = scalar_lea.vmem %s52_s8, 1024  ;;  %p1087_p12 = scmp.lt.s32.totalorder %s52_s8, %s52_s8 }
  0x1d   :  { %p1083_p11 = scmp.ne.s32.totalorder %s52_s8, %s1082_s1  ;;  %p1088_p13 = scmp.lt.s32.totalorder %s1082_s1, %s1082_s1 }
  0x1f   :  { %p1089_p0 = por %p1088_p13, %p1087_p12 }
  0x21   :  { %p1090_p1 = pnand %p1089_p0, %p1083_p11 }
  0x23   :  { %1093 = shalt.err (!%p1090_p1)
}
  0x24   :  { %57 = dma.hbm_to_vmem [thread:$0]  %s1307_s3, 1024, %s52_s8, [#allocation9], %s1191_s28, %s1191_s28, %s1192_s29  }
  0x25   :  { %s1094_s22 = scalar_lea.hbm %s1304_s0, 448 }
  0x26   :  { %p1095_p2 = scmp.ne.s32.totalorder %s1304_s0, %s1094_s22  ;;  %p1098_p3 = scmp.lt.u32.totalorder %s1094_s22, %s1304_s0 }
  0x28   :  { %p1100_p4 = pnand %p1098_p3, %p1095_p2 }
  0x2a   :  { %1103 = shalt.err (!%p1100_p4)
}
  0x2b   :  { %s1104_s27 = scalar_lea.vmem %s21_s10, 448  ;;  %p1109_p6 = scmp.lt.s32.totalorder %s21_s10, %s21_s10 }
  0x2c   :  { %p1105_p5 = scmp.ne.s32.totalorder %s21_s10, %s1104_s27  ;;  %p1110_p7 = scmp.lt.s32.totalorder %s1104_s27, %s1104_s27 }
  0x2e   :  { %p1111_p8 = por %p1110_p7, %p1109_p6 }
  0x30   :  { %p1112_p9 = pnand %p1111_p8, %p1105_p5 }
  0x32   :  { %1115 = shalt.err (!%p1112_p9)
}
  0x33   :  { %23 = dma.hbm_to_vmem [thread:$0]  %s1304_s0, 448, %s21_s10, [#allocation3]  }
  0x34   :  { %s1195_s29 = smov [#allocation7]   ;;  %s1196_s6 = smov [#allocation10]  }
  0x35   :  { %s42_s30 = sshll.u32 %s1195_s29, 4  ;;  %s64_s7 = sshll.u32 %s1196_s6, 4  ;;  %s43_s30 = int_to_ptr.vmem [resolvable:$true] %s42_s30  ;;  %s65_s7 = int_to_ptr.vmem [resolvable:$true] %s64_s7 }
  0x36   :  { %s1116_s11 = scalar_lea.hbm %s1306_s2, 16 }
  0x37   :  { %p1117_p10 = scmp.ne.s32.totalorder %s1306_s2, %s1116_s11  ;;  %p1120_p11 = scmp.lt.u32.totalorder %s1116_s11, %s1306_s2 }
  0x39   :  { %p1122_p12 = pnand %p1120_p11, %p1117_p10 }
  0x3b   :  { %1125 = shalt.err (!%p1122_p12)
}
  0x3c   :  { %s1126_s0 = scalar_lea.vmem %s43_s30, 16  ;;  %s1130_s10 = scalar_lea.vmem %s43_s30, 32 }
  0x3d   :  { %p1127_p13 = scmp.ne.s32.totalorder %s43_s30, %s1126_s0  ;;  %p1131_p0 = scmp.lt.s32.totalorder %s43_s30, %s43_s30 }
  0x3e   :  { %p1132_p1 = scmp.lt.s32.totalorder %s1130_s10, %s1126_s0 }
  0x40   :  { %p1133_p2 = por %p1132_p1, %p1131_p0 }
  0x42   :  { %p1134_p3 = pnand %p1133_p2, %p1127_p13 }
  0x44   :  { %1137 = shalt.err (!%p1134_p3)
}
  0x45   :  { %45 = dma.hbm_to_vmem [thread:$0]  %s1306_s2, 16, %s43_s30, [#allocation6]  }
  0x46   :  { %s1138_s19 = scalar_lea.hbm %s1308_s4, 16 }
  0x47   :  { %p1139_p4 = scmp.ne.s32.totalorder %s1308_s4, %s1138_s19  ;;  %p1142_p5 = scmp.lt.u32.totalorder %s1138_s19, %s1308_s4 }
  0x49   :  { %p1144_p6 = pnand %p1142_p5, %p1139_p4 }
  0x4b   :  { %1147 = shalt.err (!%p1144_p6)
}
  0x4c   :  { %s1148_s24 = scalar_lea.vmem %s65_s7, 16  ;;  %s1152_s25 = scalar_lea.vmem %s65_s7, 32 }
  0x4d   :  { %p1149_p7 = scmp.ne.s32.totalorder %s65_s7, %s1148_s24  ;;  %p1153_p8 = scmp.lt.s32.totalorder %s65_s7, %s65_s7 }
  0x4e   :  { %p1154_p9 = scmp.lt.s32.totalorder %s1152_s25, %s1148_s24 }
  0x50   :  { %p1155_p10 = por %p1154_p9, %p1153_p8 }
  0x52   :  { %p1156_p11 = pnand %p1155_p10, %p1149_p7 }
  0x54   :  { %1159 = shalt.err (!%p1156_p11)
}
  0x55   :  { %67 = dma.hbm_to_vmem [thread:$0]  %s1308_s4, 16, %s65_s7, [#allocation9]  }
  0x56   :  { %1182 = dma.done.wait [#allocation3], 448  }
  0x57   :  { %1183 = vsyncadd [#allocation3], 4294966848 }
  0x58   :  { %1184 = dma.done.wait [#allocation6], 6288  }
  0x59   :  { %1185 = vsyncadd [#allocation6], 4294961008 }
  0x5a   :  { %1186 = dma.done.wait [#allocation9], 1040  }
  0x5b   :  { %1187 = vsyncadd [#allocation9], 4294966256  ;;  %v986_v0 = vld [vmem:[#allocation5 + $0x40] sm:$0xff]   ;;  %v990_v4 = vld [vmem:[#allocation5 + $0x48] sm:$0xff]   ;;  %v1197_v43 = vmov 0.0   ;;  %vm1198_vm0 = vmmov 0  }
  0x5c   :  { %v987_v1 = vld [vmem:[#allocation5] sm:$0xff]   ;;  %873 = vmatprep.subr.bf16.mxu0 %v986_v0  ;;  %v991_v5 = vld [vmem:[#allocation5 + $0x8] sm:$0xff]   ;;  %v994_v8 = vld [vmem:[#allocation5 + $0x50] sm:$0xff]   ;;  %vm511_vm1 = vcmask 130048   ;;  %s1199_s4 = smov [#allocation11]  }
  0x5d   :  { %v988_v2 = vld [vmem:[#allocation5 + $0xc0] sm:$0xff]   ;;  %874 = vmatpush3.bf16.msra.mxu0 %v987_v1  ;;  %v992_v6 = vld [vmem:[#allocation5 + $0xc8] sm:$0xff]   ;;  %v995_v9 = vld [vmem:[#allocation5 + $0x10] sm:$0xff]   ;;  %s795_s27 = sshll.u32 %s1199_s4, 4  ;;  %s796_s27 = int_to_ptr.vmem [resolvable:$true] %s795_s27 }
  0x5e   :  { %v989_v3 = vld [vmem:[#allocation5 + $0x80] sm:$0xff]   ;;  %895 = vmatprep.subr.bf16.mxu1 %v988_v2  ;;  %875 = vmatprep.subr.bf16.mxu0 %v990_v4  ;;  %v993_v7 = vld [vmem:[#allocation5 + $0x88] sm:$0xff]   ;;  %v996_v10 = vld [vmem:[#allocation5 + $0xd0] sm:$0xff]   ;;  %s1160_s3 = scalar_lea.vmem %s796_s27, 128  ;;  %p1165_p13 = scmp.lt.s32.totalorder %s796_s27, %s796_s27 }
  0x5f   :  { %896 = vmatpush3.bf16.msra.mxu1 %v989_v3  ;;  %v997_v11 = vld [vmem:[#allocation5 + $0x90] sm:$0xff]   ;;  %v998_v12 = vld [vmem:[#allocation5 + $0x58] sm:$0xff]   ;;  %v1002_v16 = vld [vmem:[#allocation5 + $0x60] sm:$0xff]   ;;  %p1161_p12 = scmp.ne.s32.totalorder %s796_s27, %s1160_s3  ;;  %p1166_p0 = scmp.lt.s32.totalorder %s1160_s3, %s1160_s3 }
  0x60   :  { %897 = vmatprep.subr.bf16.mxu1 %v992_v6  ;;  %v999_v13 = vld [vmem:[#allocation5 + $0x18] sm:$0xff]   ;;  %v1003_v17 = vld [vmem:[#allocation5 + $0x20] sm:$0xff]   ;;  %v1006_v20 = vld [vmem:[#allocation5 + $0x68] sm:$0xff]  }
  0x61   :  { %876 = vmatpush3.bf16.msra.mxu0 %v991_v5  ;;  %v1000_v14 = vld [vmem:[#allocation5 + $0xd8] sm:$0xff]   ;;  %v1004_v18 = vld [vmem:[#allocation5 + $0xe0] sm:$0xff]   ;;  %v1007_v21 = vld [vmem:[#allocation5 + $0x28] sm:$0xff]   ;;  %p1167_p1 = por %p1166_p0, %p1165_p13 }
  0x62   :  { %877 = vmatprep.subr.bf16.mxu0 %v994_v8  ;;  %v1001_v15 = vld [vmem:[#allocation5 + $0x98] sm:$0xff]   ;;  %v1005_v19 = vld [vmem:[#allocation5 + $0xa0] sm:$0xff]   ;;  %v1008_v22 = vld [vmem:[#allocation5 + $0xe8] sm:$0xff]  }
  0x63   :  { %898 = vmatpush3.bf16.msra.mxu1 %v993_v7  ;;  %v1009_v23 = vld [vmem:[#allocation5 + $0xa8] sm:$0xff]   ;;  %v1010_v24 = vld [vmem:[#allocation5 + $0x70] sm:$0xff]   ;;  %v1014_v28 = vld [vmem:[#allocation5 + $0x78] sm:$0xff]   ;;  %p1168_p2 = pnand %p1167_p1, %p1161_p12 }
  0x64   :  { %899 = vmatprep.subr.bf16.mxu1 %v996_v10  ;;  %v1011_v25 = vld [vmem:[#allocation5 + $0x30] sm:$0xff]   ;;  %v1015_v29 = vld [vmem:[#allocation5 + $0x38] sm:$0xff]   ;;  %v84_v31 = vld [vmem:[#allocation2] sm:$0xff] }
  0x65   :  { %878 = vmatpush3.bf16.msra.mxu0 %v995_v9  ;;  %v1012_v26 = vld [vmem:[#allocation5 + $0xf0] sm:$0xff]   ;;  %v1016_v30 = vld [vmem:[#allocation5 + $0xf8] sm:$0xff]   ;;  %v807_v32 = vcombine.low %v84_v31, %v84_v31  ;;  %v808_v33 = vcombine.high %v84_v31, %v84_v31  ;;  %v1020_v35 = vld [vmem:[#allocation5 + $0x140] sm:$0xff]  }
  0x66   :  { %879 = vmatprep.subr.bf16.mxu0 %v998_v12  ;;  %v1013_v27 = vld [vmem:[#allocation5 + $0xb0] sm:$0xff]   ;;  %v1019_v34 = vld [vmem:[#allocation5 + $0xb8] sm:$0xff]   ;;  %v1023_v39 = vld [vmem:[#allocation5 + $0x100] sm:$0xff]  }
  0x67   :  { %900 = vmatpush3.bf16.msra.mxu1 %v997_v11  ;;  %v85_v36 = vld [vmem:[#allocation2 + $0x8] sm:$0xff]  ;;  %547 = vmatprep.mubr.bf16.mxu0 %v808_v33  ;;  %v1028_v45 = vld [vmem:[#allocation5 + $0x158] sm:$0xff]   ;;  %v1030_v47 = vld [vmem:[#allocation5 + $0x160] sm:$0xff]  }
  0x68   :  { %901 = vmatprep.subr.bf16.mxu1 %v1000_v14  ;;  %v809_v37 = vcombine.low %v85_v36, %v85_v36  ;;  %v810_v38 = vcombine.high %v85_v36, %v85_v36  ;;  %v1024_v40 = vld [vmem:[#allocation5 + $0x148] sm:$0xff]   ;;  %v1026_v42 = vld [vmem:[#allocation5 + $0x150] sm:$0xff]   ;;  %v1029_v46 = vld [vmem:[#allocation5 + $0x118] sm:$0xff]  }
  0x69   :  { %880 = vmatpush3.bf16.msra.mxu0 %v999_v13  ;;  %v1025_v41 = vld [vmem:[#allocation5 + $0x108] sm:$0xff]   ;;  %v1027_v44 = vld [vmem:[#allocation5 + $0x110] sm:$0xff]   ;;  %v1031_v48 = vld [vmem:[#allocation5 + $0x120] sm:$0xff]  }
  0x6a   :  { %881 = vmatprep.subr.bf16.mxu0 %v1002_v16  ;;  %587 = vmatprep.mubr.bf16.mxu1 %v810_v38  ;;  %v1032_v49 = vld [vmem:[#allocation5 + $0x168] sm:$0xff]   ;;  %v1038_v50 = vld [vmem:[#allocation5 + $0x180] sm:$0xff]   ;;  %v86_v51 = vld [vmem:[#allocation2 + $0x10] sm:$0xff] }
  0x6b   :  { %902 = vmatpush3.bf16.msra.mxu1 %v1001_v15  ;;  %v1033_v52 = vld [vmem:[#allocation5 + $0x128] sm:$0xff]   ;;  %v812_v53 = vcombine.high %v86_v51, %v86_v51  ;;  %v1041_v54 = vld [vmem:[#allocation2 + $0x18] ss:$0 sps:$4 sm:$0xff]   ;;  %v1034_v55 = vld [vmem:[#allocation5 + $0x170] sm:$0xff]   ;;  %v811_v59 = vcombine.low %v86_v51, %v86_v51 }
  0x6c   :  { %903 = vmatprep.subr.bf16.mxu1 %v1004_v18  ;;  %v1035_v56 = vld [vmem:[#allocation5 + $0x130] sm:$0xff]   ;;  %v1036_v57 = vld [vmem:[#allocation5 + $0x178] sm:$0xff]   ;;  %v1045_v63 = vld [vmem:[#allocation8 + $0x18] sm:$0xff]  }
  0x6d   :  { %882 = vmatpush3.bf16.msra.mxu0 %v1003_v17  ;;  %v1037_v58 = vld [vmem:[#allocation5 + $0x138] sm:$0xff]   ;;  %v1042_v60 = vld [vmem:[#allocation8] sm:$0xff]   ;;  %v1049_v3 = vld [vmem:[#allocation8 + $0x38] sm:$0xff]  }
  0x6e   :  { %883 = vmatprep.subr.bf16.mxu0 %v1006_v20  ;;  %v1043_v61 = vld [vmem:[#allocation8 + $0x8] sm:$0xff]   ;;  %v1044_v62 = vld [vmem:[#allocation8 + $0x10] sm:$0xff]   ;;  %v1046_v0 = vld [vmem:[#allocation8 + $0x20] sm:$0xff]  }
  0x6f   :  { %904 = vmatpush3.bf16.msra.mxu1 %v1005_v19  ;;  %v1047_v1 = vld [vmem:[#allocation8 + $0x28] sm:$0xff]   ;;  %v1048_v2 = vld [vmem:[#allocation8 + $0x30] sm:$0xff]   ;;  %v806_v5 = vld [vmem:[#allocation7] ss:$0 sm:$0xff] }
  0x70   :  { %905 = vmatprep.subr.bf16.mxu1 %v1008_v22 }
  0x71   :  { %884 = vmatpush3.bf16.msra.mxu0 %v1007_v21 }
  0x72   :  { %885 = vmatprep.subr.bf16.mxu0 %v1010_v24 }
  0x73   :  { %906 = vmatpush3.bf16.msra.mxu1 %v1009_v23 }
  0x74   :  { %907 = vmatprep.subr.bf16.mxu1 %v1012_v26 }
  0x75   :  { %886 = vmatpush3.bf16.msra.mxu0 %v1011_v25 }
  0x76   :  { %887 = vmatprep.subr.bf16.mxu0 %v1014_v28 }
  0x77   :  { %908 = vmatpush3.bf16.msra.mxu1 %v1013_v27 }
  0x78   :  { %909 = vmatprep.subr.bf16.mxu1 %v1016_v30  ;;  %v864_v30 = vld [vmem:[#allocation10] ss:$0 sm:$0xff] }
  0x79   :  { %888 = vmatpush3.bf16.msra.mxu0 %v1015_v29 }
  0x7a   :  { %917 = vmatprep.subr.bf16.mxu0 %v1020_v35 }
  0x7b   :  { %910 = vmatpush3.bf16.msra.mxu1 %v1019_v34 }
  0x7c   :  { %548 = vmatmul.mubr.bf16.vlgmr.msra.gmra.mrb[0].mxu0 %v807_v32  ;;  %950 = vmatprep.subr.bf16.mxu1 %v1197_v43 }
  0x7d   :  { %918 = vmatpush3.bf16.msra.mxu0 %v1023_v39  ;;  %627 = vmatprep.mubr.bf16.mxu0 %v812_v53 }
  0x7e   :  { %588 = vmatmul.mubr.bf16.vlgmr.msra.gmra.mrb[0].mxu1 %v809_v37  ;;  %919 = vmatprep.subr.bf16.mxu0 %v1024_v40 }
  0x7f   :  { %952 = vmatprep.mubr.msk.bf16.mxu1 %vm1198_vm0, %v1197_v43  ;;  %951 = vmatpush3.bf16.msra.mxu1 %v1038_v50 }
  0x80   :  { %956 = vmatprep.subr.bf16.mxu1 %v1197_v43 }
  0x81   :  { %920 = vmatpush3.bf16.msra.mxu0 %v1025_v41 }
  0x82   :  { %921 = vmatprep.subr.bf16.mxu0 %v1026_v42 }
  0x85   :  { %922 = vmatpush3.bf16.msra.mxu0 %v1027_v44 }
  0x86   :  { %923 = vmatprep.subr.bf16.mxu0 %v1028_v45  ;;  %953 = vmatmul.mubr.msk.bf16.vlgmr.msra.gmra.mrb[4].mxu1 %vm511_vm1, %v1041_v54 }
  0x87   :  { %972 = vmatprep.mubr.msk.bf16.mxu1 %vm1198_vm0, %v1197_v43  ;;  %957 = vmatpush3.bf16.msra.mxu1 %v1042_v60 }
  0x88   :  { %958 = vmatprep.subr.bf16.mxu1 %v1197_v43 }
  0x89   :  { %924 = vmatpush3.bf16.msra.mxu0 %v1029_v46 }
  0x8a   :  { %925 = vmatprep.subr.bf16.mxu0 %v1030_v47 }
  0x8b   :  { %959 = vmatpush3.bf16.msra.mxu1 %v1043_v61 }
  0x8c   :  { %960 = vmatprep.subr.bf16.mxu1 %v1197_v43 }
  0x8d   :  { %926 = vmatpush3.bf16.msra.mxu0 %v1031_v48 }
  0x8e   :  { %927 = vmatprep.subr.bf16.mxu0 %v1032_v49 }
  0x8f   :  { %961 = vmatpush3.bf16.msra.mxu1 %v1044_v62 }
  0x90   :  { %962 = vmatprep.subr.bf16.mxu1 %v1197_v43 }
  0x91   :  { %928 = vmatpush3.bf16.msra.mxu0 %v1033_v52 }
  0x92   :  { %929 = vmatprep.subr.bf16.mxu0 %v1034_v55 }
  0x93   :  { %963 = vmatpush3.bf16.msra.mxu1 %v1045_v63 }
  0x94   :  { %964 = vmatprep.subr.bf16.mxu1 %v1197_v43 }
  0x95   :  { %930 = vmatpush3.bf16.msra.mxu0 %v1035_v56 }
  0x96   :  { %931 = vmatprep.subr.bf16.mxu0 %v1036_v57 }
  0x97   :  { %965 = vmatpush3.bf16.msra.mxu1 %v1046_v0 }
  0x98   :  { %966 = vmatprep.subr.bf16.mxu1 %v1197_v43 }
  0x99   :  { %932 = vmatpush3.bf16.msra.mxu0 %v1037_v58 }
  0x9b   :  { %967 = vmatpush3.bf16.msra.mxu1 %v1047_v1 }
  0x9c   :  { %628 = vmatmul.mubr.bf16.vlgmr.msra.gmra.mrb[4].mxu0 %v811_v59  ;;  %968 = vmatprep.subr.bf16.mxu1 %v1197_v43 }
  0x9f   :  { %969 = vmatpush3.bf16.msra.mxu1 %v1048_v2 }
  0xa0   :  { %970 = vmatprep.subr.bf16.mxu1 %v1197_v43 }
  0xa3   :  { %971 = vmatpush3.bf16.msra.mxu1 %v1049_v3 }
 0x14f   :  { %v889_v4 = vpop.f32.mrb[0].mxu0 }
 0x150   :  { %v890_v6 = vpop.f32.mrb[1].mxu0 }
 0x151   :  { %v891_v7 = vadd.f32 %v890_v6, %v889_v4  ;;  %v892_v8 = vpop.f32.mrb[2].mxu0  ;;  %v911_v9 = vpop.f32.mrb[0].mxu1 }
 0x152   :  { %v893_v10 = vpop.f32.mrb[3].mxu0  ;;  %v912_v11 = vpop.f32.mrb[1].mxu1 }
 0x153   :  { %v550_v12 = vadd.f32 %v891_v7, %v806_v5  ;;  %v913_v13 = vadd.f32 %v912_v11, %v911_v9  ;;  %v914_v14 = vpop.f32.mrb[2].mxu1 }
 0x154   :  { %v915_v15 = vpop.f32.mrb[3].mxu1 }
 0x155   :  { %v590_v16 = vadd.f32 %v913_v13, %v550_v12 }
 0x159   :  { %v669_v17 = vpop.f32.mrb[4].mxu1 }
 0x15a   :  { %v954_v18 = vpop.f32.mrb[5].mxu1 }
 0x15b   :  { %v672_v19 = vpop.f32.mrb[6].mxu1 }
 0x15c   :  { %v955_v20 = vpop.f32.mrb[7].mxu1 }
 0x16f   :  { %v933_v21 = vpop.f32.mrb[4].mxu0 }
 0x170   :  { %v934_v22 = vpop.f32.mrb[5].mxu0 }
 0x171   :  { %v935_v23 = vadd.f32 %v934_v22, %v933_v21  ;;  %v936_v24 = vpop.f32.mrb[6].mxu0 }
 0x172   :  { %v937_v25 = vpop.f32.mrb[7].mxu0 }
 0x173   :  { %v630_v26 = vadd.f32 %v935_v23, %v590_v16 }
 0x175   :  { %v670_v27 = vadd.f32 %v669_v17, %v630_v26 }
 0x177   :  { %v675_v28 = vmax.f32 %v670_v27, 0.0 }
 0x179   :  { %v676_v29 = vpack.c.bf16 %v675_v28, %v675_v28 }
 0x17b   :  { %973 = vmatmul.mubr.bf16.vlgmr.msra.gmra.mrb[8].mxu1 %v676_v29 }
 0x24e   :  { %v782_v31 = vpop.f32.mrb[8].mxu1 }
 0x24f   :  { %v783_v32 = vadd.f32 %v864_v30, %v782_v31  ;;  %v974_v33 = vpop.f32.mrb[9].mxu1 }
 0x250   :  { %v785_v34 = vpop.f32.mrb[10].mxu1 }
 0x251   :  { %788 = vst [vmem:[#allocation11] sm:$0xff] %v783_v32  ;;  %v975_v35 = vpop.f32.mrb[11].mxu1 }
 0x252   :  { %1171 = shalt.err (!%p1168_p2)
}
 0x253   :  { %s1172_s30 = scalar_lea.hbm %s1309_s5, 128 }
 0x254   :  { %p1173_p3 = scmp.ne.s32.totalorder %s1309_s5, %s1172_s30  ;;  %p1176_p4 = scmp.lt.u32.totalorder %s1172_s30, %s1309_s5 }
 0x256   :  { %p1178_p5 = pnand %p1176_p4, %p1173_p3 }
 0x258   :  { %1181 = shalt.err (!%p1178_p5)
}
 0x259   :  { %798 = dma.vmem_to_hbm [thread:$0]  %s796_s27, 128, %s1309_s5, [#allocation4]  }
 0x25a   :  { %1188 = dma.done.wait [#allocation4], 128  }
 0x25b   :  { %1189 = vsyncadd [#allocation4], 4294967168 }
 0x25c   :  { %802 = vsyncpa [#allocation3], 1 }
 0x25d   :  { %803 = vsyncpa [#allocation6], 1 }
 0x25e   :  { %804 = vsyncpa [#allocation9], 1 }
 0x25f   :  { %805 = vsyncpa [#allocation4], 1 }

</bundles_post_ra>
